<compile_context>
chip_gen: v5e
topology: v5e:2x2
jax: 0.10.0
libtpu: 0.0.40
codegen_flags: <defaults>
</compile_context>

<pallas_src>
import functools
import math

import jax
import jax.numpy as jnp
from jax.experimental import pallas as pl
from jax.experimental.pallas import tpu as pltpu


def attention_spatial_kernel(x_ref, gamma_ref, beta_ref, gsum_ref,
                             wqk_ref, wvo_ref, bo_ref, o_ref,
                             *, eps, inv_count, tq):
    x = x_ref[0]                                           # (C, HW) f32

    # ---- GroupNorm statistics over (group channels x all spatial) ----
    row_sum = jnp.sum(x, axis=1, keepdims=True)            # (C, 1)
    row_sqsum = jnp.sum(x * x, axis=1, keepdims=True)      # (C, 1)
    # gsum is the block-diagonal "same group" ones matrix -> group sums,
    # broadcast back to every channel of the group, in one tiny matmul.
    mean_c = jnp.dot(gsum_ref[...], row_sum,
                     preferred_element_type=jnp.float32) * inv_count      # (C, 1)
    ex2_c = jnp.dot(gsum_ref[...], row_sqsum,
                    preferred_element_type=jnp.float32) * inv_count       # (C, 1)
    var_c = ex2_c - mean_c * mean_c
    inv_std = jax.lax.rsqrt(var_c + eps)                   # EUP
    scale_c = inv_std * gamma_ref[...]                     # (C, 1)
    shift_c = beta_ref[...] - mean_c * scale_c             # (C, 1)

    xn = (x * scale_c + shift_c).astype(jnp.bfloat16)      # (C, HW) bf16

    # ---- folded projections (bf16 MXU, f32 accumulate) ----
    t_mat = jnp.dot(wqk_ref[...], xn,
                    preferred_element_type=jnp.float32).astype(jnp.bfloat16)  # (C, HW)
    vo = jnp.dot(wvo_ref[...], xn,
                 preferred_element_type=jnp.float32).astype(jnp.bfloat16)     # (C, HW)

    # ---- query tile of this grid step ----
    q0 = pl.multiple_of(pl.program_id(1) * tq, tq)
    x_q = x_ref[0, :, pl.ds(q0, tq)]                       # (C, TQ) f32 (residual too)
    xn_q = x_q * scale_c + shift_c                         # (C, TQ) f32
    xn_q_t = jnp.transpose(xn_q).astype(jnp.bfloat16)      # (TQ, C) bf16 (small XLU xpose)

    # scores[s, t] = sum_i xn_q[i, s] * (Wqk @ xn)[i, t]   (1/sqrt(C) already in Wqk)
    scores = jnp.dot(xn_q_t, t_mat,
                     preferred_element_type=jnp.float32)   # (TQ, HW) f32

    # ---- softmax over the key axis (f32 VPU/EUP math) ----
    m = jnp.max(scores, axis=-1, keepdims=True)            # (TQ, 1)
    p = jnp.exp(scores - m)                                # (TQ, HW)
    denom = jnp.sum(p, axis=-1, keepdims=True)             # (TQ, 1)
    p = (p * pl.reciprocal(denom, approx=True)).astype(jnp.bfloat16)

    # out[c, s] = sum_t p[s, t] * vo[c, t]   (rhs-transposed contraction)
    out = jax.lax.dot_general(vo, p, (((1,), (1,)), ((), ())),
                              preferred_element_type=jnp.float32)         # (C, TQ)

    # ---- output bias + residual; lane-dense (C, TQ) store ----
    o_ref[0] = (out + bo_ref[...] + x_q).astype(o_ref.dtype)


def attention_spatial(x_nchw, gamma, beta, wq, wk, wv, wo, bo, *,
                      norm_groups=16, eps=1e-5):
    """Forward of Attention_spatial (n_head=1).  Weights are PyTorch-style
    (C_out, C_in) 1x1-conv matrices; bo is the output-conv bias (C,)."""
    B, C, H, W = x_nchw.shape
    HW = H * W
    G = norm_groups
    assert C % G == 0, "channels must be divisible by norm_groups"
    cg = C // G

    # Query-tile size: lane-dense (multiple of 128) when possible.
    tq = 128 if (HW % 128 == 0) else HW
    nq = HW // tq

    # Free reshape, no HBM transpose.
    x_f = x_nchw.reshape(B, C, HW).astype(jnp.float32)

    # Block-diagonal "same group" ones matrix (C, C) for GroupNorm stats.
    ch = jnp.arange(C)
    gsum = (ch[:, None] // cg == ch[None, :] // cg).astype(jnp.float32)

    # Fold the four 1x1 convs into two matrices (and fold in 1/sqrt(C)).
    wqk = (wq.T @ wk * (1.0 / math.sqrt(C))).astype(jnp.bfloat16)   # (C, C)
    wvo = (wo @ wv).astype(jnp.bfloat16)                            # (C, C)

    gamma_c = gamma.reshape(C, 1).astype(jnp.float32)
    beta_c = beta.reshape(C, 1).astype(jnp.float32)
    bo_c = bo.reshape(C, 1).astype(jnp.float32)

    kernel = functools.partial(
        attention_spatial_kernel,
        eps=float(eps),                       # python floats: NOT captured tracers
        inv_count=1.0 / float(cg * HW),
        tq=tq)

    full2d = lambda b, q: (0, 0)
    out = pl.pallas_call(
        kernel,
        out_shape=jax.ShapeDtypeStruct((B, C, HW), jnp.float32),
        grid=(B, nq),
        in_specs=[
            pl.BlockSpec((1, C, HW), lambda b, q: (b, 0, 0)),   # x   (re-used across q)
            pl.BlockSpec((C, 1), full2d),                       # gamma
            pl.BlockSpec((C, 1), full2d),                       # beta
            pl.BlockSpec((C, C), full2d),                       # group-sum matrix
            pl.BlockSpec((C, C), full2d),                       # Wqk (bf16)
            pl.BlockSpec((C, C), full2d),                       # Wvo (bf16)
            pl.BlockSpec((C, 1), full2d),                       # out bias
        ],
        out_specs=pl.BlockSpec((1, C, tq), lambda b, q: (b, 0, q)),
        compiler_params=pltpu.CompilerParams(
            dimension_semantics=("parallel", "parallel"),
            vmem_limit_bytes=32 * 1024 * 1024),
    )(x_f, gamma_c, beta_c, gsum, wqk, wvo, bo_c)

    # Free reshape back to NCHW.
    return out.reshape(B, C, H, W)


def _reference(x_nchw, gamma, beta, wq, wk, wv, wo, bo, *, norm_groups=16, eps=1e-5):
    """Pure-JAX reference mirroring the PyTorch forward (n_head=1)."""
    B, C, H, W = x_nchw.shape
    HW = H * W
    G = norm_groups
    xg = x_nchw.reshape(B, G, -1)
    mean = xg.mean(axis=-1, keepdims=True)
    var = xg.var(axis=-1, keepdims=True)
    xn = ((xg - mean) / jnp.sqrt(var + eps)).reshape(B, C, H, W)
    xn = xn * gamma.reshape(1, C, 1, 1) + beta.reshape(1, C, 1, 1)

    xf = xn.reshape(B, C, HW)
    q = jnp.einsum('oi,bis->bos', wq, xf)
    k = jnp.einsum('oi,bis->bos', wk, xf)
    v = jnp.einsum('oi,bis->bos', wv, xf)
    attn = jnp.einsum('bcs,bct->bst', q, k) / math.sqrt(C)
    attn = jax.nn.softmax(attn, axis=-1)
    out = jnp.einsum('bst,bct->bcs', attn, v)
    out = jnp.einsum('oc,bcs->bos', wo, out) + bo.reshape(1, C, 1)
    return out.reshape(B, C, H, W) + x_nchw


if __name__ == "__main__":
    B, C, H, W = 2, 32, 16, 16
    norm_groups = 16

    key = jax.random.PRNGKey(0)
    kx, kq, kk, kv, ko, kb, kg, kbt = jax.random.split(key, 8)

    x = jax.random.normal(kx, (B, C, H, W), dtype=jnp.float32)

    # 1x1 conv weights in PyTorch (C_out, C_in) convention.
    wq = jax.random.normal(kq, (C, C), dtype=jnp.float32) * 0.05
    wk = jax.random.normal(kk, (C, C), dtype=jnp.float32) * 0.05
    wv = jax.random.normal(kv, (C, C), dtype=jnp.float32) * 0.05
    wo = jax.random.normal(ko, (C, C), dtype=jnp.float32) * 0.05
    bo = jax.random.normal(kb, (C,), dtype=jnp.float32) * 0.01
    gamma = 1.0 + 0.1 * jax.random.normal(kg, (C,), dtype=jnp.float32)
    beta = 0.1 * jax.random.normal(kbt, (C,), dtype=jnp.float32)

    out = attention_spatial(x, gamma, beta, wq, wk, wv, wo, bo,
                            norm_groups=norm_groups)
    out = jax.block_until_ready(out)

    ref = _reference(x, gamma, beta, wq, wk, wv, wo, bo, norm_groups=norm_groups)
    ref = jax.block_until_ready(ref)

    assert out.shape == (B, C, H, W)
    max_err = float(jnp.max(jnp.abs(out - ref)))
    # bf16 MXU operands -> tolerance appropriate for bf16 compute.
    assert jnp.allclose(out, ref, rtol=2e-2, atol=2e-2), (
        f"mismatch vs JAX reference (max abs err {max_err})")

    print("KERNEL_OK")
</pallas_src>

<mosaic_0001>
module attributes {stable_mosaic.version = 11 : i64} {
  func.func @attention_spatial_kernel(%arg0: i32, %arg1: i32, %arg2: memref<1x32x256xf32, #tpu.memory_space<vmem>>, %arg3: memref<32x1xf32, #tpu.memory_space<vmem>>, %arg4: memref<32x1xf32, #tpu.memory_space<vmem>>, %arg5: memref<32x32xf32, #tpu.memory_space<vmem>>, %arg6: memref<32x32xbf16, #tpu.memory_space<vmem>>, %arg7: memref<32x32xbf16, #tpu.memory_space<vmem>>, %arg8: memref<32x1xf32, #tpu.memory_space<vmem>>, %arg9: memref<1x32x128xf32, #tpu.memory_space<vmem>>) attributes {dimension_semantics = [#tpu.dimension_semantics<parallel>, #tpu.dimension_semantics<parallel>], iteration_bounds = array<i64: 2, 2>, scalar_prefetch = 0 : i64, scratch_operands = 0 : i64, tpu.core_type = #tpu.core_type<tc>, window_params = [{transform_indices = @transform_0, window_bounds = array<i64: 1, 32, 256>}, {pipeline_mode = #tpu.pipeline_mode<synchronous>, transform_indices = @transform_1, window_bounds = array<i64: 32, 1>}, {pipeline_mode = #tpu.pipeline_mode<synchronous>, transform_indices = @transform_2, window_bounds = array<i64: 32, 1>}, {pipeline_mode = #tpu.pipeline_mode<synchronous>, transform_indices = @transform_3, window_bounds = array<i64: 32, 32>}, {pipeline_mode = #tpu.pipeline_mode<synchronous>, transform_indices = @transform_4, window_bounds = array<i64: 32, 32>}, {pipeline_mode = #tpu.pipeline_mode<synchronous>, transform_indices = @transform_5, window_bounds = array<i64: 32, 32>}, {pipeline_mode = #tpu.pipeline_mode<synchronous>, transform_indices = @transform_6, window_bounds = array<i64: 32, 1>}, {transform_indices = @transform_7, window_bounds = array<i64: 1, 32, 128>}]} {
    %c0 = arith.constant 0 : index
    %c0_0 = arith.constant 0 : index
    %c0_1 = arith.constant 0 : index
    %0 = vector.load %arg2[%c0, %c0_0, %c0_1] : memref<1x32x256xf32, #tpu.memory_space<vmem>>, vector<1x32x256xf32>
    %1 = vector.shape_cast %0 : vector<1x32x256xf32> to vector<32x256xf32>
    %cst = arith.constant dense<0.000000e+00> : vector<32xf32>
    %2 = vector.multi_reduction <add>, %1, %cst [1] : vector<32x256xf32> to vector<32xf32>
    %3 = vector.shape_cast %2 : vector<32xf32> to vector<32x1xf32>
    %4 = arith.mulf %1, %1 : vector<32x256xf32>
    %cst_2 = arith.constant dense<0.000000e+00> : vector<32xf32>
    %5 = vector.multi_reduction <add>, %4, %cst_2 [1] : vector<32x256xf32> to vector<32xf32>
    %6 = vector.shape_cast %5 : vector<32xf32> to vector<32x1xf32>
    %c0_3 = arith.constant 0 : index
    %c0_4 = arith.constant 0 : index
    %7 = vector.load %arg5[%c0_3, %c0_4] : memref<32x32xf32, #tpu.memory_space<vmem>>, vector<32x32xf32>
    %cst_5 = arith.constant dense<0.000000e+00> : vector<32x1xf32>
    %8 = tpu.matmul %7, %3, %cst_5 {dimension_numbers = #tpu.dot_dimension_numbers<[1], [0], [0], [1], [0, 0, 1, 1], [], []>} : vector<32x32xf32>, vector<32x1xf32>, vector<32x1xf32> -> vector<32x1xf32>
    %cst_6 = arith.constant 0.001953125 : f32
    %9 = vector.broadcast %cst_6 : f32 to vector<32x1xf32>
    %10 = arith.mulf %8, %9 : vector<32x1xf32>
    %c0_7 = arith.constant 0 : index
    %c0_8 = arith.constant 0 : index
    %11 = vector.load %arg5[%c0_7, %c0_8] : memref<32x32xf32, #tpu.memory_space<vmem>>, vector<32x32xf32>
    %cst_9 = arith.constant dense<0.000000e+00> : vector<32x1xf32>
    %12 = tpu.matmul %11, %6, %cst_9 {dimension_numbers = #tpu.dot_dimension_numbers<[1], [0], [0], [1], [0, 0, 1, 1], [], []>} : vector<32x32xf32>, vector<32x1xf32>, vector<32x1xf32> -> vector<32x1xf32>
    %cst_10 = arith.constant 0.001953125 : f32
    %13 = vector.broadcast %cst_10 : f32 to vector<32x1xf32>
    %14 = arith.mulf %12, %13 : vector<32x1xf32>
    %15 = arith.mulf %10, %10 : vector<32x1xf32>
    %16 = arith.subf %14, %15 : vector<32x1xf32>
    %cst_11 = arith.constant 9.99999974E-6 : f32
    %17 = vector.broadcast %cst_11 : f32 to vector<32x1xf32>
    %18 = arith.addf %16, %17 : vector<32x1xf32>
    %19 = math.rsqrt %18 : vector<32x1xf32>
    %c0_12 = arith.constant 0 : index
    %c0_13 = arith.constant 0 : index
    %20 = vector.load %arg3[%c0_12, %c0_13] : memref<32x1xf32, #tpu.memory_space<vmem>>, vector<32x1xf32>
    %21 = arith.mulf %19, %20 : vector<32x1xf32>
    %c0_14 = arith.constant 0 : index
    %c0_15 = arith.constant 0 : index
    %22 = vector.load %arg4[%c0_14, %c0_15] : memref<32x1xf32, #tpu.memory_space<vmem>>, vector<32x1xf32>
    %23 = arith.mulf %10, %21 : vector<32x1xf32>
    %24 = arith.subf %22, %23 : vector<32x1xf32>
    %25 = vector.broadcast %21 : vector<32x1xf32> to vector<32x256xf32>
    %26 = arith.mulf %1, %25 : vector<32x256xf32>
    %27 = vector.broadcast %24 : vector<32x1xf32> to vector<32x256xf32>
    %28 = arith.addf %26, %27 : vector<32x256xf32>
    %29 = arith.truncf %28 : vector<32x256xf32> to vector<32x256xbf16>
    %c0_16 = arith.constant 0 : index
    %c0_17 = arith.constant 0 : index
    %30 = vector.load %arg6[%c0_16, %c0_17] : memref<32x32xbf16, #tpu.memory_space<vmem>>, vector<32x32xbf16>
    %cst_18 = arith.constant dense<0.000000e+00> : vector<32x256xf32>
    %31 = tpu.matmul %30, %29, %cst_18 {dimension_numbers = #tpu.dot_dimension_numbers<[1], [0], [0], [1], [0, 0, 1, 1], [], []>} : vector<32x32xbf16>, vector<32x256xbf16>, vector<32x256xf32> -> vector<32x256xf32>
    %32 = arith.truncf %31 : vector<32x256xf32> to vector<32x256xbf16>
    %c0_19 = arith.constant 0 : index
    %c0_20 = arith.constant 0 : index
    %33 = vector.load %arg7[%c0_19, %c0_20] : memref<32x32xbf16, #tpu.memory_space<vmem>>, vector<32x32xbf16>
    %cst_21 = arith.constant dense<0.000000e+00> : vector<32x256xf32>
    %34 = tpu.matmul %33, %29, %cst_21 {dimension_numbers = #tpu.dot_dimension_numbers<[1], [0], [0], [1], [0, 0, 1, 1], [], []>} : vector<32x32xbf16>, vector<32x256xbf16>, vector<32x256xf32> -> vector<32x256xf32>
    %35 = arith.truncf %34 : vector<32x256xf32> to vector<32x256xbf16>
    %c128_i32 = arith.constant 128 : i32
    %36 = arith.muli %arg1, %c128_i32 : i32
    %37 = tpu.assume_multiple %36, 128 : i32
    %c0_22 = arith.constant 0 : index
    %c0_23 = arith.constant 0 : index
    %38 = arith.index_cast %37 : i32 to index
    %39 = vector.load %arg2[%c0_22, %c0_23, %38] : memref<1x32x256xf32, #tpu.memory_space<vmem>>, vector<1x32x128xf32>
    %40 = vector.shape_cast %39 : vector<1x32x128xf32> to vector<32x128xf32>
    %41 = vector.broadcast %21 : vector<32x1xf32> to vector<32x128xf32>
    %42 = arith.mulf %40, %41 : vector<32x128xf32>
    %43 = vector.broadcast %24 : vector<32x1xf32> to vector<32x128xf32>
    %44 = arith.addf %42, %43 : vector<32x128xf32>
    %45 = tpu.transpose %44, [1, 0] : vector<32x128xf32> -> vector<128x32xf32>
    %46 = arith.truncf %45 : vector<128x32xf32> to vector<128x32xbf16>
    %cst_24 = arith.constant dense<0.000000e+00> : vector<128x256xf32>
    %47 = tpu.matmul %46, %32, %cst_24 {dimension_numbers = #tpu.dot_dimension_numbers<[1], [0], [0], [1], [0, 0, 1, 1], [], []>} : vector<128x32xbf16>, vector<32x256xbf16>, vector<128x256xf32> -> vector<128x256xf32>
    %cst_25 = arith.constant dense<0xFF800000> : vector<128xf32>
    %48 = vector.multi_reduction <maximumf>, %47, %cst_25 [1] : vector<128x256xf32> to vector<128xf32>
    %49 = vector.shape_cast %48 : vector<128xf32> to vector<128x1xf32>
    %50 = vector.broadcast %49 : vector<128x1xf32> to vector<128x256xf32>
    %51 = arith.subf %47, %50 : vector<128x256xf32>
    %52 = math.exp %51 : vector<128x256xf32>
    %cst_26 = arith.constant dense<0.000000e+00> : vector<128xf32>
    %53 = vector.multi_reduction <add>, %52, %cst_26 [1] : vector<128x256xf32> to vector<128xf32>
    %54 = vector.shape_cast %53 : vector<128xf32> to vector<128x1xf32>
    %55 = tpu.reciprocal %54 {approx = true} : vector<128x1xf32> -> vector<128x1xf32>
    %56 = vector.broadcast %55 : vector<128x1xf32> to vector<128x256xf32>
    %57 = arith.mulf %52, %56 : vector<128x256xf32>
    %58 = arith.truncf %57 : vector<128x256xf32> to vector<128x256xbf16>
    %cst_27 = arith.constant dense<0.000000e+00> : vector<32x128xf32>
    %59 = tpu.matmul %35, %58, %cst_27 {dimension_numbers = #tpu.dot_dimension_numbers<[1], [1], [0], [0], [0, 0, 1, 0], [], []>} : vector<32x256xbf16>, vector<128x256xbf16>, vector<32x128xf32> -> vector<32x128xf32>
    %c0_28 = arith.constant 0 : index
    %c0_29 = arith.constant 0 : index
    %60 = vector.load %arg8[%c0_28, %c0_29] : memref<32x1xf32, #tpu.memory_space<vmem>>, vector<32x1xf32>
    %61 = vector.broadcast %60 : vector<32x1xf32> to vector<32x128xf32>
    %62 = arith.addf %59, %61 : vector<32x128xf32>
    %63 = arith.addf %62, %40 : vector<32x128xf32>
    %c0_30 = arith.constant 0 : index
    %c0_31 = arith.constant 0 : index
    %c0_32 = arith.constant 0 : index
    %64 = vector.load %arg9[%c0_30, %c0_31, %c0_32] : memref<1x32x128xf32, #tpu.memory_space<vmem>>, vector<1x32x128xf32>
    %65 = vector.shape_cast %64 : vector<1x32x128xf32> to vector<32x128xf32>
    %66 = vector.shape_cast %63 : vector<32x128xf32> to vector<1x32x128xf32>
    tpu.vector_store %arg9[%c0_30, %c0_31, %c0_32], %66 {strides = array<i32>} : memref<1x32x128xf32, #tpu.memory_space<vmem>>, vector<1x32x128xf32>,
    return
  }
  func.func @transform_0(%arg0: i32, %arg1: i32) -> (i32, i32, i32) {
    %c0_i32 = arith.constant 0 : i32
    %c0_i32_0 = arith.constant 0 : i32
    %c0_i32_1 = arith.constant 0 : i32
    return %arg0, %c0_i32, %c0_i32_0 : i32, i32, i32
  }
  func.func @transform_1(%arg0: i32, %arg1: i32) -> (i32, i32) {
    %c0_i32 = arith.constant 0 : i32
    %c0_i32_0 = arith.constant 0 : i32
    %c0_i32_1 = arith.constant 0 : i32
    return %c0_i32, %c0_i32_0 : i32, i32
  }
  func.func @transform_2(%arg0: i32, %arg1: i32) -> (i32, i32) {
    %c0_i32 = arith.constant 0 : i32
    %c0_i32_0 = arith.constant 0 : i32
    %c0_i32_1 = arith.constant 0 : i32
    return %c0_i32, %c0_i32_0 : i32, i32
  }
  func.func @transform_3(%arg0: i32, %arg1: i32) -> (i32, i32) {
    %c0_i32 = arith.constant 0 : i32
    %c0_i32_0 = arith.constant 0 : i32
    %c0_i32_1 = arith.constant 0 : i32
    return %c0_i32, %c0_i32_0 : i32, i32
  }
  func.func @transform_4(%arg0: i32, %arg1: i32) -> (i32, i32) {
    %c0_i32 = arith.constant 0 : i32
    %c0_i32_0 = arith.constant 0 : i32
    %c0_i32_1 = arith.constant 0 : i32
    return %c0_i32, %c0_i32_0 : i32, i32
  }
  func.func @transform_5(%arg0: i32, %arg1: i32) -> (i32, i32) {
    %c0_i32 = arith.constant 0 : i32
    %c0_i32_0 = arith.constant 0 : i32
    %c0_i32_1 = arith.constant 0 : i32
    return %c0_i32, %c0_i32_0 : i32, i32
  }
  func.func @transform_6(%arg0: i32, %arg1: i32) -> (i32, i32) {
    %c0_i32 = arith.constant 0 : i32
    %c0_i32_0 = arith.constant 0 : i32
    %c0_i32_1 = arith.constant 0 : i32
    return %c0_i32, %c0_i32_0 : i32, i32
  }
  func.func @transform_7(%arg0: i32, %arg1: i32) -> (i32, i32, i32) {
    %c0_i32 = arith.constant 0 : i32
    %c0_i32_0 = arith.constant 0 : i32
    return %arg0, %c0_i32, %arg1 : i32, i32, i32
  }
}

</mosaic_0001>

<bundles_post_ra>
// kernel: tpu_custom_call.1
= control target key start
LH: loop header
LB: loop body
LE: loop exit
PB: predicated region body
PF: predicated region fallthrough
CT: control target
= control target key end

     0   :  { %s2389_s0 = inlined_call_operand.hbm [shape: f32[2,32,256], index: 0, kind: input, shape index: {}]   ;;  %s2390_s1 = inlined_call_operand.vmem [shape: f32[32,1], index: 1, kind: input, shape index: {}]   ;;  %s2391_s2 = inlined_call_operand.vmem [shape: f32[32,1], index: 2, kind: input, shape index: {}]   ;;  %s2392_s3 = inlined_call_operand.vmem [shape: f32[32,32], index: 3, kind: input, shape index: {}]   ;;  %s2393_s4 = inlined_call_operand.vmem [shape: bf16[32,32], index: 4, kind: input, shape index: {}]   ;;  %s2394_s5 = inlined_call_operand.vmem [shape: bf16[32,32], index: 5, kind: input, shape index: {}]   ;;  %s2395_s6 = inlined_call_operand.vmem [shape: f32[32,1], index: 6, kind: input, shape index: {}]   ;;  %s2396_s7 = inlined_call_operand.hbm [shape: f32[2,32,256], index: 7, kind: output, shape index: {}]  }
   0x1   :  { %2404 = sst [smem:[#allocation15_spill]] %s2396_s7 }
   0x2   :  { %12 = vsyncpa [#allocation3], 0 }
   0x3   :  { %14 = vsyncpa [#allocation3 + $0x1], 0 }
   0x4   :  { %15 = vsyncpa [#allocation4], 0 }
   0x5   :  { %17 = vsyncpa [#allocation4 + $0x1], 0  ;;  %s1793_s24 = smov 0   ;;  %s1795_s25 = smov 0  }
   0x6   :  { %s1797_s26 = smov 0   ;;  %s1799_s27 = smov 0  }
   0x7   :  { %s1801_s28 = smov 0   ;;  %s1803_s29 = smov 0  }
   0x8   :  { %s1805_s30 = smov 0   ;;  %s1807_s8 = smov 0  }
   0x9   :  { %s1809_s9 = smov 0   ;;  %s1811_s10 = smov 0  }
   0xa   :  { %s1813_s11 = smov 0  }
   0xb LB: > { %2405 = sst [smem:[#allocation8_spill]] %s1737_s9  ;;  %s1303_s12 = sadd.s32 4294967295, %s1745_s11   ;;  %s1745_s11 = sphi %s1813_s11, %s23_s11   ;;  %s1741_s10 = sphi %s1811_s10, %s2423_s10   ;;  %s1737_s9 = sphi %s1809_s9, %s2422_s9   ;;  %s1733_s8 = sphi %s1807_s8, %s2421_s8   ;;  %s1729_s30 = sphi %s1805_s30, %s2420_s30   ;;  %s1725_s29 = sphi %s1803_s29, %s2429_s29   ;;  %s1721_s28 = sphi %s1801_s28, %s2428_s28   ;;  %s1717_s27 = sphi %s1799_s27, %s2427_s27   ;;  %s1713_s26 = sphi %s1797_s26, %s2426_s26   ;;  %s1709_s25 = sphi %s1795_s25, %s2425_s25   ;;  %s1705_s24 = sphi %s1793_s24, %s2424_s24  }
   0xc   : > { %2406 = sst [smem:[#allocation9_spill]] %s1741_s10  ;;  %s1304_s13 = sadd.s32 4294967294, %s1745_s11  }
   0xd   : > { %s32_s14 = sadd.s32 1, %s1737_s9  ;;  %s35_s15 = sadd.s32 1, %s1741_s10 }
   0xe   : > { %p33_p0 = scmp.ge.s32.totalorder %s32_s14, 2  ;;  %s42_s16 = sadd.s32 1, %s1725_s29 }
   0xf   : > { %p49_p1 = scmp.ne.s32.totalorder %s1725_s29, %s1721_s28  ;;  %p50_p2 = scmp.eq.s32.totalorder %s1745_s11, 0 }
  0x10   : > { %s2431_s14 = smov (%p33_p0, %s32_s14), 0  ;;  %s2433_s15 = smov (!%p33_p0, %s35_s15), %s1741_s10 }
  0x11   : > { %2407 = sst [smem:[#allocation10_spill]] %s2431_s14  ;;  %p1857_p3 = por %p50_p2, %p49_p1 }
  0x12   : > { %p55_p4 = scmp.ne.s32.totalorder %s1721_s28, %s1717_s27  ;;  %p37_p5 = scmp.ge.s32.totalorder %s2433_s15, 2 }
  0x13   : > { %p56_p6 = scmp.eq.s32.totalorder %s1303_s12, 0  ;;  %s192_s18 = ssub.s32 %s1737_s9, %s2431_s14 }
  0x14   : > { %s196_s19 = sadd.s32 1, %s1713_s26  ;;  %s2435_s15 = smov (%p37_p5, %s2433_s15), 0 }
  0x15   : > { %2409 = sst [smem:[#allocation11_spill]] %s2435_s15  ;;  %p1867_p7 = por %p56_p6, %p55_p4 }
  0x16   : > { %p206_p8 = scmp.ne.s32.totalorder %s1713_s26, %s1709_s25  ;;  %s39_s21 = ssub.s32 %s1741_s10, %s2435_s15 }
  0x17   : > { %p207_p9 = scmp.eq.s32.totalorder %s1303_s12, 3  ;;  %p40_p10 = scmp.eq.s32.totalorder %s39_s21, 0 }
  0x18   : > { %s193_s22 = sor.u32 %s192_s18, %s39_s21  ;;  %p212_p13 = scmp.ne.s32.totalorder %s1709_s25, %s1705_s24 }
  0x19   : > { %p194_p11 = scmp.eq.s32.totalorder %s193_s22, 0  ;;  %p1875_p12 = por %p207_p9, %p206_p8 }
  0x1a   : > { %s1880_s27 = scalar_select %p40_p10, %s1725_s29, %s42_s16  }
  0x1b   : > { %s2411_s23 = scalar_select %p1875_p12, 1, 0 }
  0x1c   : > { %2413 = sst [smem:[#allocation13_spill]] %s1880_s27  ;;  %p213_p0 = scmp.eq.s32.totalorder %s1304_s13, 3 }
  0x1d   : > { %2412 = sst [smem:[#allocation12_spill]] %s2411_s23  ;;  %p1389_p1 = scmp.lt.s32.totalorder %s1745_s11, 4 }
  0x1e   : > { %s1883_s14 = scalar_select %p194_p11, %s1713_s26, %s196_s19  }
  0x1f   : > { %p1888_p2 = por %p213_p0, %p212_p13  ;;  %s251_s12 = sand.u32 1, %s1725_s29  }
  0x20   : > { %2414 = sst [smem:[#allocation14_spill]] %s1883_s14  ;;  %s1307_s18 = sshll.u32 %s251_s12, 6 }
  0x21   : > { %s1368_s21 = sshll.u32 %s1741_s10, 6  ;;  %s255_s16 = scalar_lea.vmem [#allocation2], %s1307_s18 }
  0x22   : > { %s260_s23 = scalar_lea.hbm %s2389_s0, %s1368_s21  ;;  %s263_s27 = sshll.u32 %s255_s16, 4  ;;  %s264_s27 = int_to_ptr.vmem [resolvable:$true] %s263_s27 }
  0x23   : > { %s261_s7 = sshll.u32 %s260_s23, 4  ;;  %p1382_p4 = pnand %p1389_p1, %p1857_p3  ;;  %s262_s7 = int_to_ptr.hbm [resolvable:$true] %s261_s7 }
  0x24   : > { %p1310_p5 = scmp.ge.s32.totalorder %s1745_s11, 1  ;;  %s252_s13 = scalar_lea.sflag [#allocation3], %s251_s12 }
  0x25   : > { %s1747_s19 = smov 256   ;;  %s1748_s14 = smov 16  }
  0x26   : > { %1384 = dma.hbm_to_vmem [thread:$0]  (!%p1382_p4), %s262_s7, 1024, %s264_s27, %s252_s13, %s1747_s19, %s1747_s19, %s1748_s14  }
  0x27   : > { %p271_p6 = scmp.lt.s32.totalorder %s1745_s11, 5 }
  0x29   : > { %p272_p8 = pnand %p1310_p5, %p271_p6 }
  0x2a   : > { %s277_s10 = sand.u32 (!%p272_p8), 1, %s1721_s28  }
  0x2b   : > { %275 = sbr.rel (%p272_p8) target bundleno = 1394 (0x572), region = 48  ;;  %s1311_s15 = sshll.u32 (!%p272_p8), %s277_s10, 6 }
  0x2c   : > { %s278_s21 = scalar_lea.sflag (!%p272_p8), [#allocation3], %s277_s10  ;;  %s1902_s18 = scalar_lea.vmem (!%p272_p8), [#allocation2], %s1311_s15 }
  0x30   : > { %1696 = dma.done.wait (%p1867_p7), %s278_s21, 1024  }
  0x31   : > { %1698 = vsyncadd (%p1867_p7), %s278_s21, 4294966272  ;;  %v1909_v0 = vld [vmem:[%s1902_s18 + $0x30] sm:$0xff]  ;;  %v1912_v1 = vld [vmem:[%s1902_s18 + $0x38] sm:$0xff]  ;;  %vm358_vm0 = vcmask 261120   ;;  %v1749_v49 = vmov 0   ;;  %s1345_s13 = sshll.u32 %s1729_s30, 7 }
  0x32   : > { %v1915_v2 = vld [vmem:[%s1902_s18 + $0x10] sm:$0xff]  ;;  %v331_v3 = vadd.f32 %v1912_v1, %v1909_v0  ;;  %v1920_v4 = vld [vmem:[%s1902_s18 + $0x18] sm:$0xff]  ;;  %v1923_v5 = vld [vmem:[%s1902_s18 + $0x20] sm:$0xff]  ;;  %v340_v11 = vmul.f32 %v1909_v0, %v1909_v0  ;;  %v341_v12 = vmul.f32 %v1912_v1, %v1912_v1  ;;  %1486 = vset.pattern.permute.xlu2 %v1749_v49  ;;  %1488 = vset.pattern.permute.xlu1 %v1749_v49  ;;  %s694_s19 = sshra.s32 %s1345_s13, 7  ;;  %s310_s7 = sand.u32 1, %s1709_s25  }
  0x33   : > { %v1926_v6 = vld [vmem:[%s1902_s18 + $0x28] sm:$0xff]  ;;  %v325_v7 = vadd.f32 %v1920_v4, %v1915_v2  ;;  %v338_v8 = vmul.f32 %v1923_v5, %v1923_v5  ;;  %v1941_v14 = vld [vmem:[%s1902_s18] sm:$0xff]  ;;  %v336_v18 = vmul.f32 %v1915_v2, %v1915_v2  ;;  %v337_v19 = vmul.f32 %v1920_v4, %v1920_v4  ;;  %v356_v34 = vld [vmem:[%s2392_s3 + $0x10] sm:$0xff]  ;;  %1487 = vset.pattern.permute.xlu0 %v1749_v49  ;;  %s1346_s15 = sshll.u32 %s694_s19, 3  ;;  %s1312_s10 = sshll.u32 %s310_s7, 5 }
  0x34   : > { %v339_v9 = vmul.f32 %v1926_v6, %v1926_v6  ;;  %332 = vadd.xlane.f32.xlu0 %v331_v3  ;;  %v328_v13 = vadd.f32 %v1926_v6, %v1923_v5  ;;  %v1944_v15 = vld [vmem:[%s1902_s18 + $0x8] sm:$0xff]  ;;  %v351_v16 = vadd.f32 %v341_v12, %v340_v11  ;;  %v334_v20 = vmul.f32 %v1941_v14, %v1941_v14  ;;  %v354_v30 = vld [vmem:[%s2392_s3] sm:$0xff]  ;;  %v357_v35 = vld [vmem:[%s2392_s3 + $0x18] sm:$0xff]  ;;  %s2022_s21 = scalar_lea.vmem %s1902_s18, %s1346_s15 [#allocation2]  ;;  %s312_s14 = scalar_lea.vmem [#allocation5], %s1312_s10 }
  0x35   : > { %326 = vadd.xlane.f32.xlu1 %v325_v7  ;;  %v322_v17 = vadd.f32 %v1944_v15, %v1941_v14  ;;  %v335_v21 = vmul.f32 %v1944_v15, %v1944_v15  ;;  %v345_v22 = vadd.f32 %v337_v19, %v336_v18  ;;  %v355_v33 = vld [vmem:[%s2392_s3 + $0x8] sm:$0xff]  ;;  %s1364_s17 = sshll.u32 %s1733_s8, 3  ;;  %s2416_s22 = sld [smem:[#allocation15_spill]] }
  0x36   : > { %v348_v10 = vadd.f32 %v339_v9, %v338_v8  ;;  %s1209_s20 = sadd.s32 %s1729_s30, %s1364_s17  ;;  %s1212_s19 = sshll.u32 %s312_s14, 4  ;;  %s1213_s19 = int_to_ptr.vmem [resolvable:$true] %s1212_s19 }
  0x37   : > { %v342_v23 = vadd.f32 %v335_v21, %v334_v20  ;;  %s1365_s23 = sshll.u32 %s1209_s20, 3  ;;  %s1199_s30 = scalar_lea.sflag [#allocation4], %s310_s7 }
  0x38   : > { %349 = vadd.xlane.f32.xlu2 %v348_v10 }
  0x3b   : > { %s1211_s16 = scalar_lea.hbm %s2416_s22, %s1365_s23  ;;  %s1643_s17 = scalar_lea.hbm %s2416_s22, 128 }
  0x3c   : > { %329 = vadd.xlane.f32.xlu0 %v328_v13  ;;  %s1214_s8 = sshll.u32 %s1211_s16, 4  ;;  %s1215_s8 = int_to_ptr.hbm [resolvable:$true] %s1214_s8 }
  0x3d   : > { %352 = vadd.xlane.f32.xlu1 %v351_v16  ;;  %s1637_s15 = sshra.s32 %s1215_s8, 4  ;;  %s1638_s15 = int_to_ptr.hbm [resolvable:$true] %s1637_s15 }
  0x3e   : > { %p1644_p10 = scmp.lt.s32.totalorder %s1638_s15, %s2416_s22 }
  0x40   : > { %323 = vadd.xlane.f32.xlu2 %v322_v17 }
  0x44   : > { %346 = vadd.xlane.f32.xlu0 %v345_v22 }
  0x45   : > { %343 = vadd.xlane.f32.xlu1 %v342_v23 }
  0xa7   : > { %v333_v24 = vpop.xlane.xlu0 %332 }
  0xa8   : > { %v327_v25 = vpop.xlane.xlu1 %326  ;;  %383 = vmatpush.msra.mxu0 %v333_v24 }
  0xab   : > { %v350_v26 = vpop.xlane.xlu2 %349 }
  0xaf   : > { %v330_v27 = vpop.xlane.xlu0 %329 }
  0xb0   : > { %v353_v28 = vpop.xlane.xlu1 %352  ;;  %384 = vmatpush.msra.mxu0 %v330_v27 }
  0xb1   : > { %416 = vmatpush.msra.mxu1 %v353_v28 }
  0xb2   : > { %385 = vmatpush.msra.mxu0 %v327_v25 }
  0xb3   : > { %v324_v29 = vpop.xlane.xlu2 %323  ;;  %417 = vmatpush.msra.mxu1 %v350_v26  ;;  %v491_v26 = vld [vmem:[%s2390_s1 + $0x10] sm:$0xff] }
  0xb4   : > { %386 = vmatpush.msra.mxu0 %v324_v29 }
  0xb5   : > { %1313 = vmatmul.msk.f32.vlgmr.msra.gmra.mxu0 %vm358_vm0, %v354_v30 }
  0xb7   : > { %v347_v31 = vpop.xlane.xlu0 %346 }
  0xb8   : > { %418 = vmatpush.msra.mxu1 %v347_v31  ;;  %v344_v32 = vpop.xlane.xlu1 %343 }
  0xba   : > { %419 = vmatpush.msra.mxu1 %v344_v32 }
  0xbb   : > { %1317 = vmatmul.msk.f32.vlgmr.msra.gmra.mxu1 %vm358_vm0, %v354_v30 }
  0xbd   : > { %1314 = vmatmul.msk.f32.gmra.mxu0 %vm358_vm0, %v355_v33 }
  0xc3   : > { %1318 = vmatmul.msk.f32.gmra.mxu1 %vm358_vm0, %v355_v33  ;;  %v499_v33 = vld [vmem:[%s2391_s2 + $0x10] sm:$0xff] }
  0xc5   : > { %1315 = vmatmul.msk.f32.gmra.mxu0 %vm358_vm0, %v356_v34 }
  0xcb   : > { %1319 = vmatmul.msk.f32.gmra.mxu1 %vm358_vm0, %v356_v34 }
  0xcd   : > { %1316 = vmatmul.msk.f32.gmra.mxu0 %vm358_vm0, %v357_v35 }
  0xd3   : > { %1320 = vmatmul.msk.f32.gmra.mxu1 %vm358_vm0, %v357_v35 }
 0x132   : > { %v388_v36 = vpop.f32.mrf.mxu0 }
 0x133   : > { %v1976_v37 = vmul.f32 0.001953125, %v388_v36 }
 0x135   : > { %v437_v40 = vmul.f32 %v1976_v37, %v1976_v37 }
 0x138   : > { %v421_v38 = vpop.f32.mrf.mxu1 }
 0x139   : > { %v433_v41 = vmul.f32 0.001953125, %v421_v38 }
 0x13a   : > { %v391_v39 = vpop.f32.mrf.mxu0 }
 0x13b   : > { %v1980_v42 = vmul.f32 0.001953125, %v391_v39  ;;  %v441_v43 = vsub.f32 %v433_v41, %v437_v40  ;;  %v489_v39 = vld [vmem:[%s2390_s1] sm:$0xff]  ;;  %v492_v41 = vld [vmem:[%s2390_s1 + $0x18] sm:$0xff] }
 0x13d   : > { %v438_v45 = vmul.f32 %v1980_v42, %v1980_v42  ;;  %v445_v50 = vadd.f32 1e-05, %v441_v43 }
 0x13f   : > { %1489 = vrsqrt.f32 %v445_v50  ;;  %vm455_vm7 = vweird.f32 %v445_v50 }
 0x140   : > { %v424_v44 = vpop.f32.mrf.mxu1 }
 0x141   : > { %v434_v46 = vmul.f32 0.001953125, %v424_v44 }
 0x142   : > { %v394_v47 = vpop.f32.mrf.mxu0 }
 0x143   : > { %v402_v48 = vmul.f32 0.001953125, %v394_v47  ;;  %v442_v51 = vsub.f32 %v434_v46, %v438_v45 }
 0x145   : > { %v439_v52 = vmul.f32 %v402_v48, %v402_v48  ;;  %v1984_v54 = vadd.f32 1e-05, %v442_v51  ;;  %v1490_v60 = vpop.eup %1489  ;;  %v500_v51 = vld [vmem:[%s2391_s2 + $0x18] sm:$0xff] }
 0x146   : > { %v450_v63 = vmul.f32 %v1490_v60, %v445_v50  ;;  %vm456_vm4 = vweird.f32 %v1490_v60 }
 0x147   : > { %1491 = vrsqrt.f32 %v1984_v54  ;;  %vm457_vm8 = vmor %vm455_vm7, %vm456_vm4  ;;  %vm465_vm11 = vweird.f32 %v1984_v54 }
 0x148   : > { %v427_v53 = vpop.f32.mrf.mxu1  ;;  %v451_v10 = vmul.f32 %v1490_v60, %v450_v63 }
 0x149   : > { %v435_v55 = vmul.f32 0.001953125, %v427_v53 }
 0x14a   : > { %v397_v56 = vpop.f32.mrf.mxu0  ;;  %v452_v17 = vmul.f32 0.5, %v451_v10 }
 0x14b   : > { %v443_v57 = vsub.f32 %v435_v55, %v439_v52  ;;  %v1986_v58 = vmul.f32 0.001953125, %v397_v56 }
 0x14c   : > { %v453_v22 = vsub.f32 1.5, %v452_v17 }
 0x14d   : > { %v447_v59 = vadd.f32 1e-05, %v443_v57  ;;  %v440_v61 = vmul.f32 %v1986_v58, %v1986_v58  ;;  %v1492_v7 = vpop.eup %1491  ;;  %v497_v57 = vld [vmem:[%s2391_s2] sm:$0xff] }
 0x14e   : > { %v460_v12 = vmul.f32 %v1492_v7, %v1984_v54  ;;  %v454_v30 = vmul.f32 %v1490_v60, %v453_v22  ;;  %vm466_vm10 = vweird.f32 %v1492_v7  ;;  %v498_v54 = vld [vmem:[%s2391_s2 + $0x8] sm:$0xff] }
 0x14f   : > { %1493 = vrsqrt.f32 %v447_v59  ;;  %vm475_vm2 = vweird.f32 %v447_v59  ;;  %vm467_vm12 = vmor %vm465_vm11, %vm466_vm10 }
 0x150   : > { %v430_v62 = vpop.f32.mrf.mxu1  ;;  %v461_v18 = vmul.f32 %v1492_v7, %v460_v12  ;;  %v458_v38 = vsel %vm457_vm8, %v1490_v60, %v454_v30 }
 0x151   : > { %v436_v3 = vmul.f32 0.001953125, %v430_v62  ;;  %v493_v45 = vmul.f32 %v489_v39, %v458_v38 }
 0x152   : > { %v462_v23 = vmul.f32 0.5, %v461_v18 }
 0x153   : > { %v444_v8 = vsub.f32 %v436_v3, %v440_v61  ;;  %v501_v56 = vmul.f32 %v493_v45, %v1976_v37  ;;  %v2025_v61 = vld [vmem:[%s2022_s21] sm:$0xff] }
 0x154   : > { %v463_v31 = vsub.f32 1.5, %v462_v23 }
 0x155   : > { %v1494_v9 = vpop.eup %1493  ;;  %v448_v11 = vadd.f32 1e-05, %v444_v8 }
 0x156   : > { %v470_v13 = vmul.f32 %v1494_v9, %v447_v59  ;;  %vm476_vm1 = vweird.f32 %v1494_v9  ;;  %v464_v43 = vmul.f32 %v1492_v7, %v463_v31 }
 0x157   : > { %1495 = vrsqrt.f32 %v448_v11  ;;  %vm477_vm3 = vmor %vm475_vm2, %vm476_vm1  ;;  %vm485_vm5 = vweird.f32 %v448_v11 }
 0x158   : > { %v471_v16 = vmul.f32 %v1494_v9, %v470_v13  ;;  %v468_v47 = vsel %vm467_vm12, %v1492_v7, %v464_v43 }
 0x15a   : > { %v472_v19 = vmul.f32 0.5, %v471_v16 }
 0x15c   : > { %v473_v20 = vsub.f32 1.5, %v472_v19 }
 0x15d   : > { %v1496_v21 = vpop.eup %1495 }
 0x15e   : > { %v480_v24 = vmul.f32 %v1496_v21, %v448_v11  ;;  %v474_v25 = vmul.f32 %v1494_v9, %v473_v20  ;;  %vm486_vm6 = vweird.f32 %v1496_v21 }
 0x15f   : > { %vm487_vm9 = vmor %vm485_vm5, %vm486_vm6 }
 0x160   : > { %v481_v27 = vmul.f32 %v1496_v21, %v480_v24  ;;  %v478_v28 = vsel %vm477_vm3, %v1494_v9, %v474_v25 }
 0x161   : > { %v495_v29 = vmul.f32 %v491_v26, %v478_v28 }
 0x162   : > { %v482_v32 = vmul.f32 0.5, %v481_v27 }
 0x163   : > { %521 = vperm.xlu2 %1486, %v495_v29   ;;  %v503_v34 = vmul.f32 %v495_v29, %v402_v48  ;;  %v490_v48 = vld [vmem:[%s2390_s1 + $0x8] sm:$0xff] }
 0x164   : > { %v483_v35 = vsub.f32 1.5, %v482_v32  ;;  %v494_v49 = vmul.f32 %v490_v48, %v468_v47  ;;  %v2055_v32 = vld [vmem:[%s2022_s21 + $0x30] sm:$0xff] }
 0x165   : > { %v507_v36 = vsub.f32 %v499_v33, %v503_v34 }
 0x166   : > { %v484_v40 = vmul.f32 %v1496_v21, %v483_v35  ;;  %v502_v53 = vmul.f32 %v494_v49, %v1980_v42 }
 0x167   : > { %549 = vperm.xlu1 %1488, %v507_v36  }
 0x168   : > { %v488_v44 = vsel %vm487_vm9, %v1496_v21, %v484_v40  ;;  %v506_v55 = vsub.f32 %v498_v54, %v502_v53  ;;  %v2033_v21 = vld [vmem:[%s2022_s21 + $0x10] sm:$0xff] }
 0x169   : > { %v496_v46 = vmul.f32 %v492_v41, %v488_v44 }
 0x16b   : > { %511 = vperm.xlu2 %1486, %v493_v45   ;;  %526 = vperm.xlu0 %1487, %v496_v46   ;;  %v504_v50 = vmul.f32 %v496_v46, %v1986_v58  ;;  %v505_v58 = vsub.f32 %v497_v57, %v501_v56 }
 0x16d   : > { %v508_v52 = vsub.f32 %v500_v51, %v504_v50 }
 0x16f   : > { %516 = vperm.xlu1 %1488, %v494_v49  }
 0x173   : > { %554 = vperm.xlu2 %1486, %v508_v52  }
 0x177   : > { %544 = vperm.xlu1 %1488, %v506_v55  }
 0x17b   : > { %539 = vperm.xlu2 %1486, %v505_v58  }
 0x1bd   : > { %v522_v59 = vpop.permute.xlu2 %521 }
 0x1be   : > { %v533_v8 = vmul.f32 %v522_v59, %v1923_v5  ;;  %v534_v11 = vmul.f32 %v522_v59, %v1926_v6 }
 0x1c5   : > { %v512_v60 = vpop.permute.xlu2 %511 }
 0x1c6   : > { %v702_v37 = vmul.f32 %v2025_v61, %v512_v60  ;;  %v529_v5 = vmul.f32 %v512_v60, %v1941_v14  ;;  %v1370_v14 = vld [vmem:[%s2393_s4 + $0x8] sm:$0xff] }
 0x1cd   : > { %v555_v42 = vpop.permute.xlu2 %554 }
 0x1d5   : > { %v540_v62 = vpop.permute.xlu2 %539 }
 0x1d6   : > { %v706_v63 = vadd.f32 %v702_v37, %v540_v62  ;;  %v557_v23 = vadd.f32 %v540_v62, %v529_v5 }
 0x1d8   : > { %710 = vxpose.xlu0.b32.start [1/4] (short) %v706_v63, 128 }
 0x1d9   : > { %v550_v3 = vpop.permute.xlu1 %549 }
 0x1da   : > { %v561_v12 = vadd.f32 %v550_v3, %v533_v8  ;;  %v562_v17 = vadd.f32 %v550_v3, %v534_v11 }
 0x1dd   : > { %v527_v7 = vpop.permute.xlu0 %526 }
 0x1de   : > { %v535_v9 = vmul.f32 %v527_v7, %v1909_v0  ;;  %v536_v10 = vmul.f32 %v527_v7, %v1912_v1  ;;  %v530_v0 = vmul.f32 %v512_v60, %v1944_v15  ;;  %v705_v33 = vmul.f32 %v2055_v32, %v527_v7 }
 0x1e0   : > { %v563_v13 = vadd.f32 %v555_v42, %v535_v9  ;;  %v564_v16 = vadd.f32 %v555_v42, %v536_v10  ;;  %v558_v25 = vadd.f32 %v540_v62, %v530_v0  ;;  %v709_v34 = vadd.f32 %v705_v33, %v555_v42 }
 0x1e1   : > { %v517_v18 = vpop.permute.xlu1 %516 }
 0x1e2   : > { %v567_v19 = vpack.c.bf16 %v563_v13, %v561_v12  ;;  %v568_v20 = vpack.c.bf16 %v564_v16, %v562_v17  ;;  %v531_v1 = vmul.f32 %v517_v18, %v1915_v2  ;;  %v532_v6 = vmul.f32 %v517_v18, %v1920_v4  ;;  %v1369_v2 = vld [vmem:[%s2393_s4] sm:$0xff] }
 0x1e3   : > { %v703_v22 = vmul.f32 %v2033_v21, %v517_v18  ;;  %v2047_v4 = vld [vmem:[%s2022_s21 + $0x20] sm:$0xff]  ;;  %s1639_s21 = scalar_lea.hbm %s1638_s15, 32 }
 0x1e4   : > { %595 = vmatpush.bf16.msrb.mxu0 %v567_v19  ;;  %1373 = vmatpush.bf16.msra.mxu2 %v567_v19  ;;  %v704_v15 = vmul.f32 %v2047_v4, %v522_v59  ;;  %p1640_p3 = scmp.ne.s32.totalorder %s1638_s15, %s1639_s21  ;;  %p1645_p11 = scmp.lt.s32.totalorder %s1643_s17, %s1639_s21 }
 0x1e5   : > { %614 = vmatpush.bf16.msrb.mxu1 %v568_v20  ;;  %1375 = vmatpush.bf16.msra.mxu3 %v568_v20 }
 0x1e6   : > { %v708_v31 = vadd.f32 %v704_v15, %v550_v3  ;;  %p1641_p7 = pnand %p1640_p3, %p1875_p12  ;;  %p1646_p13 = por %p1645_p11, %p1644_p10 }
 0x1e8   : > { %p1642_p9 = pneg %p1641_p7 }
 0x1e9   : > { %v545_v24 = vpop.permute.xlu1 %544 }
 0x1ea   : > { %v559_v26 = vadd.f32 %v545_v24, %v531_v1  ;;  %v560_v27 = vadd.f32 %v545_v24, %v532_v6  ;;  %v707_v28 = vadd.f32 %v703_v22, %v545_v24  ;;  %p1647_p0 = pnand %p1646_p13, %p1642_p9 }
 0x1ec   : > { %711 = vxpose.xlu0.b32.cont [2/4] (short) %v707_v28, 128  ;;  %v565_v29 = vpack.c.bf16 %v559_v26, %v557_v23  ;;  %v566_v30 = vpack.c.bf16 %v560_v27, %v558_v25 }
 0x1ee   : > { %596 = vmatpush.bf16.msrb.mxu0 %v565_v29  ;;  %1374 = vmatpush.bf16.msra.mxu2 %v565_v29 }
 0x1ef   : > { %615 = vmatpush.bf16.msrb.mxu1 %v566_v30  ;;  %1376 = vmatpush.bf16.msra.mxu3 %v566_v30 }
 0x1f1   : > { %1330 = vmatmul.msk.bf16.vlgmr.msra.gmra.mxu2 %vm358_vm0, %v1370_v14  ;;  %1329 = vmatmul.msk.bf16.vlgmr.msrb.gmra.mxu0 %vm358_vm0, %v1369_v2 }
 0x1f2   : > { %657 = vmatpush.bf16.msra.mxu0 %v567_v19  ;;  %1332 = vmatmul.msk.bf16.vlgmr.msra.gmra.mxu3 %vm358_vm0, %v1370_v14 }
 0x1f3   : > { %676 = vmatpush.bf16.msra.mxu1 %v568_v20 }
 0x1f4   : > { %1331 = vmatmul.msk.bf16.vlgmr.msrb.gmra.mxu1 %vm358_vm0, %v1369_v2  ;;  %712 = vxpose.xlu0.b32.cont [3/4] (short) %v708_v31, 128 }
 0x1f6   : > { %658 = vmatpush.bf16.msra.mxu0 %v565_v29 }
 0x1f7   : > { %677 = vmatpush.bf16.msra.mxu1 %v566_v30 }
 0x1fc   : > { %713 = vxpose.xlu0.b32.end [4/4] (short) %v709_v34, 128 }
 0x26e   : > { %v598_v35 = vpop.f32.mrf.mxu0 }
 0x271   : > { %v617_v36 = vpop.f32.mrf.mxu1 }
 0x274   : > { %v603_v38 = vpop.f32.mrf.mxu2 }
 0x275   : > { %v622_v39 = vpop.f32.mrf.mxu3 }
 0x276   : > { %v600_v41 = vpop.f32.mrf.mxu0 }
 0x277   : > { %v627_v47 = vpack.c.bf16 %v600_v41, %v598_v35 }
 0x279   : > { %v619_v45 = vpop.f32.mrf.mxu1 }
 0x27a   : > { %v628_v48 = vpack.c.bf16 %v619_v45, %v617_v36 }
 0x27c   : > { %v605_v40 = vpop.f32.mrf.mxu2 }
 0x27d   : > { %v629_v43 = vpack.c.bf16 %v605_v40, %v603_v38  ;;  %v624_v44 = vpop.f32.mrf.mxu3 }
 0x27e   : > { %v630_v46 = vpack.c.bf16 %v624_v44, %v622_v39 }
 0x27f   : > { %780 = vmatpush.bf16.msrb.mxu2 %v629_v43 }
 0x280   : > { %829 = vmatpush.bf16.msrb.mxu3 %v630_v46 }
 0x283   : > { %781 = vmatpush.bf16.msrb.mxu2 %v627_v47 }
 0x284   : > { %830 = vmatpush.bf16.msrb.mxu3 %v628_v48 }
 0x288   : > { %v726_v49 = vpop.trf.xlu0 }
 0x290   : > { %v727_v50 = vpop.trf.xlu0 }
 0x291   : > { %v742_v51 = vpack.c.bf16 %v727_v50, %v726_v49 }
 0x293   : > { %1347 = vmatmul.msk.bf16.vlgmr.msrb.gmra.mxu2 %vm358_vm0, %v742_v51  ;;  %1355 = vmatmul.msk.bf16.vlgmr.msrb.gmra.mxu3 %vm358_vm0, %v742_v51 }
 0x298   : > { %v728_v52 = vpop.trf.xlu0 }
 0x2a0   : > { %v729_v53 = vpop.trf.xlu0 }
 0x2a1   : > { %v743_v54 = vpack.c.bf16 %v729_v53, %v728_v52 }
 0x2a3   : > { %1348 = vmatmul.msk.bf16.gmra.mxu2 %vm358_vm0, %v743_v54  ;;  %1356 = vmatmul.msk.bf16.gmra.mxu3 %vm358_vm0, %v743_v54 }
 0x2a8   : > { %v730_v55 = vpop.trf.xlu0 }
 0x2b0   : > { %v731_v56 = vpop.trf.xlu0 }
 0x2b1   : > { %v744_v57 = vpack.c.bf16 %v731_v56, %v730_v55 }
 0x2b3   : > { %1349 = vmatmul.msk.bf16.gmra.mxu2 %vm358_vm0, %v744_v57  ;;  %1357 = vmatmul.msk.bf16.gmra.mxu3 %vm358_vm0, %v744_v57 }
 0x2b8   : > { %v732_v58 = vpop.trf.xlu0 }
 0x2c0   : > { %v733_v59 = vpop.trf.xlu0 }
 0x2c1   : > { %v745_v60 = vpack.c.bf16 %v733_v59, %v732_v58 }
 0x2c3   : > { %1350 = vmatmul.msk.bf16.gmra.mxu2 %vm358_vm0, %v745_v60  ;;  %1358 = vmatmul.msk.bf16.gmra.mxu3 %vm358_vm0, %v745_v60 }
 0x2c8   : > { %v734_v42 = vpop.trf.xlu0 }
 0x2d0   : > { %v735_v37 = vpop.trf.xlu0 }
 0x2d1   : > { %v746_v62 = vpack.c.bf16 %v735_v37, %v734_v42 }
 0x2d3   : > { %1351 = vmatmul.msk.bf16.gmra.mxu2 %vm358_vm0, %v746_v62  ;;  %1359 = vmatmul.msk.bf16.gmra.mxu3 %vm358_vm0, %v746_v62 }
 0x2d8   : > { %v736_v63 = vpop.trf.xlu0 }
 0x2e0   : > { %v737_v3 = vpop.trf.xlu0 }
 0x2e1   : > { %v747_v7 = vpack.c.bf16 %v737_v3, %v736_v63 }
 0x2e3   : > { %1352 = vmatmul.msk.bf16.gmra.mxu2 %vm358_vm0, %v747_v7  ;;  %1360 = vmatmul.msk.bf16.gmra.mxu3 %vm358_vm0, %v747_v7 }
 0x2e8   : > { %v738_v8 = vpop.trf.xlu0 }
 0x2f0   : > { %v739_v9 = vpop.trf.xlu0 }
 0x2f1   : > { %v748_v10 = vpack.c.bf16 %v739_v9, %v738_v8 }
 0x2f3   : > { %1353 = vmatmul.msk.bf16.gmra.mxu2 %vm358_vm0, %v748_v10  ;;  %1361 = vmatmul.msk.bf16.gmra.mxu3 %vm358_vm0, %v748_v10 }
 0x2f8   : > { %v740_v11 = vpop.trf.xlu0 }
 0x300   : > { %v741_v12 = vpop.trf.xlu0 }
 0x301   : > { %v749_v13 = vpack.c.bf16 %v741_v12, %v740_v11 }
 0x303   : > { %1354 = vmatmul.msk.bf16.gmra.mxu2 %vm358_vm0, %v749_v13  ;;  %1362 = vmatmul.msk.bf16.gmra.mxu3 %vm358_vm0, %v749_v13 }
 0x316   : > { %v2074_v16 = vpop.f32.mrf.mxu2  ;;  %v2076_v17 = vpop.f32.mrf.mxu3 }
 0x317   : > { %v872_v60 = vmax.f32 %v2074_v16, %v2076_v17 }
 0x31e   : > { %v2078_v18 = vpop.f32.mrf.mxu2  ;;  %v2080_v19 = vpop.f32.mrf.mxu3 }
 0x31f   : > { %v875_v58 = vmax.f32 %v2078_v18, %v2080_v19 }
 0x326   : > { %v2082_v20 = vpop.f32.mrf.mxu2  ;;  %v2084_v5 = vpop.f32.mrf.mxu3 }
 0x327   : > { %v878_v59 = vmax.f32 %v2082_v20, %v2084_v5 }
 0x32e   : > { %v2086_v0 = vpop.f32.mrf.mxu2  ;;  %v2088_v1 = vpop.f32.mrf.mxu3 }
 0x32f   : > { %v881_v56 = vmax.f32 %v2086_v0, %v2088_v1 }
 0x336   : > { %v2090_v6 = vpop.f32.mrf.mxu2  ;;  %v2092_v22 = vpop.f32.mrf.mxu3 }
 0x337   : > { %v884_v57 = vmax.f32 %v2090_v6, %v2092_v22 }
 0x33e   : > { %v2094_v23 = vpop.f32.mrf.mxu2  ;;  %v2096_v24 = vpop.f32.mrf.mxu3 }
 0x33f   : > { %v887_v54 = vmax.f32 %v2094_v23, %v2096_v24 }
 0x346   : > { %v2098_v25 = vpop.f32.mrf.mxu2  ;;  %v2100_v26 = vpop.f32.mrf.mxu3 }
 0x347   : > { %v890_v55 = vmax.f32 %v2098_v25, %v2100_v26 }
 0x34e   : > { %v2102_v27 = vpop.f32.mrf.mxu2  ;;  %v2104_v28 = vpop.f32.mrf.mxu3 }
 0x34f   : > { %v893_v52 = vmax.f32 %v2102_v27, %v2104_v28 }
 0x356   : > { %v2106_v29 = vpop.f32.mrf.mxu2  ;;  %v2108_v30 = vpop.f32.mrf.mxu3 }
 0x357   : > { %v896_v50 = vmax.f32 %v2106_v29, %v2108_v30 }
 0x35e   : > { %v2110_v14 = vpop.f32.mrf.mxu2  ;;  %v2112_v2 = vpop.f32.mrf.mxu3 }
 0x35f   : > { %v899_v15 = vmax.f32 %v2110_v14, %v2112_v2 }
 0x361   : > { %900 = vmax.xlane.f32.xlu0 %v899_v15 }
 0x366   : > { %v2116_v31 = vpop.f32.mrf.mxu2  ;;  %v2118_v33 = vpop.f32.mrf.mxu3 }
 0x367   : > { %v902_v49 = vmax.f32 %v2116_v31, %v2118_v33 }
 0x36e   : > { %v2120_v34 = vpop.f32.mrf.mxu2  ;;  %v2122_v35 = vpop.f32.mrf.mxu3 }
 0x36f   : > { %v905_v53 = vmax.f32 %v2120_v34, %v2122_v35 }
 0x376   : > { %v813_v36 = vpop.f32.mrf.mxu2  ;;  %v862_v38 = vpop.f32.mrf.mxu3 }
 0x377   : > { %v908_v39 = vmax.f32 %v813_v36, %v862_v38 }
 0x379   : > { %909 = vmax.xlane.f32.xlu2 %v908_v39 }
 0x37e   : > { %v2124_v40 = vpop.f32.mrf.mxu2  ;;  %v2126_v41 = vpop.f32.mrf.mxu3 }
 0x37f   : > { %v911_v51 = vmax.f32 %v2124_v40, %v2126_v41 }
 0x386   : > { %v818_v43 = vpop.f32.mrf.mxu2  ;;  %v867_v44 = vpop.f32.mrf.mxu3 }
 0x387   : > { %v914_v45 = vmax.f32 %v818_v43, %v867_v44 }
 0x389   : > { %915 = vmax.xlane.f32.xlu2 %v914_v45 }
 0x38e   : > { %v820_v46 = vpop.f32.mrf.mxu2  ;;  %v869_v47 = vpop.f32.mrf.mxu3 }
 0x38f   : > { %v917_v48 = vmax.f32 %v820_v46, %v869_v47 }
 0x391   : > { %903 = vmax.xlane.f32.xlu2 %v902_v49  ;;  %918 = vmax.xlane.f32.xlu1 %v917_v48 }
 0x399   : > { %897 = vmax.xlane.f32.xlu2 %v896_v50  ;;  %912 = vmax.xlane.f32.xlu1 %v911_v51 }
 0x3a1   : > { %894 = vmax.xlane.f32.xlu2 %v893_v52  ;;  %906 = vmax.xlane.f32.xlu1 %v905_v53 }
 0x3a9   : > { %888 = vmax.xlane.f32.xlu2 %v887_v54  ;;  %891 = vmax.xlane.f32.xlu1 %v890_v55 }
 0x3b1   : > { %882 = vmax.xlane.f32.xlu2 %v881_v56  ;;  %885 = vmax.xlane.f32.xlu1 %v884_v57 }
 0x3b9   : > { %876 = vmax.xlane.f32.xlu2 %v875_v58  ;;  %879 = vmax.xlane.f32.xlu1 %v878_v59 }
 0x3c1   : > { %873 = vmax.xlane.f32.xlu1 %v872_v60 }
 0x3ec   : > { %v910_v42 = vpop.xlane.xlu2 %909 }
 0x3ed   : > { %v944_v3 = vsub.f32 %v813_v36, %v910_v42  ;;  %v945_v9 = vsub.f32 %v862_v38, %v910_v42 }
 0x3ef   : > { %v1000_v10 = vmul.f32 1.442695, %v944_v3  ;;  %v1002_v11 = vmul.f32 1.442695, %v945_v9  ;;  %v901_v3 = vpop.xlane.xlu0 %900 }
 0x3fc   : > { %v916_v37 = vpop.xlane.xlu2 %915 }
 0x3fd   : > { %v948_v62 = vsub.f32 %v818_v43, %v916_v37  ;;  %v949_v63 = vsub.f32 %v867_v44, %v916_v37 }
 0x3ff   : > { %v1008_v7 = vmul.f32 1.442695, %v948_v62  ;;  %v1010_v8 = vmul.f32 1.442695, %v949_v63 }
 0x401   : > { %1497 = vpow2.f32 %v1008_v7 }
 0x402   : > { %1499 = vpow2.f32 %v1010_v8 }
 0x403   : > { %1501 = vpow2.f32 %v1000_v10 }
 0x404   : > { %v904_v12 = vpop.xlane.xlu2 %903  ;;  %v919_v13 = vpop.xlane.xlu1 %918  ;;  %1503 = vpow2.f32 %v1002_v11  ;;  %v938_v11 = vsub.f32 %v2110_v14, %v901_v3 }
 0x405   : > { %v950_v15 = vsub.f32 %v820_v46, %v919_v13  ;;  %v951_v39 = vsub.f32 %v869_v47, %v919_v13  ;;  %v940_v48 = vsub.f32 %v2116_v31, %v904_v12  ;;  %v941_v36 = vsub.f32 %v2118_v33, %v904_v12 }
 0x407   : > { %v2152_v45 = vpop.eup %1497  ;;  %v1012_v49 = vmul.f32 1.442695, %v950_v15  ;;  %v1014_v38 = vmul.f32 1.442695, %v951_v39  ;;  %v992_v50 = vmul.f32 1.442695, %v940_v48 }
 0x408   : > { %v2155_v43 = vpop.eup %1499  ;;  %v994_v46 = vmul.f32 1.442695, %v941_v36  ;;  %v988_v48 = vmul.f32 1.442695, %v938_v11  ;;  %v1371_v36 = vld [vmem:[%s2394_s5] sm:$0xff] }
 0x409   : > { %v1058_v44 = vadd.f32 %v2155_v43, %v2152_v45  ;;  %1505 = vpow2.f32 %v1012_v49  ;;  %v2160_v52 = vpop.eup %1501  ;;  %1341 = vmatmul.msk.bf16.vlgmr.msra.gmra.mxu0 %vm358_vm0, %v1371_v36  ;;  %1343 = vmatmul.msk.bf16.vlgmr.msra.gmra.mxu1 %vm358_vm0, %v1371_v36 }
 0x40a   : > { %1507 = vpow2.f32 %v1014_v38  ;;  %v2164_v54 = vpop.eup %1503 }
 0x40b   : > { %1059 = vadd.xlane.f32.xlu1 %v1058_v44  ;;  %1509 = vpow2.f32 %v992_v50  ;;  %v1052_v59 = vadd.f32 %v2164_v54, %v2160_v52 }
 0x40c   : > { %v898_v47 = vpop.xlane.xlu2 %897  ;;  %v913_v51 = vpop.xlane.xlu1 %912  ;;  %1511 = vpow2.f32 %v994_v46 }
 0x40d   : > { %v946_v31 = vsub.f32 %v2124_v40, %v913_v51  ;;  %v947_v53 = vsub.f32 %v2126_v41, %v913_v51  ;;  %v936_v33 = vsub.f32 %v2106_v29, %v898_v47  ;;  %v937_v56 = vsub.f32 %v2108_v30, %v898_v47 }
 0x40f   : > { %v1004_v55 = vmul.f32 1.442695, %v946_v31  ;;  %v1006_v57 = vmul.f32 1.442695, %v947_v53  ;;  %v2168_v58 = vpop.eup %1505  ;;  %v984_v40 = vmul.f32 1.442695, %v936_v33 }
 0x410   : > { %v2172_v60 = vpop.eup %1507  ;;  %v986_v42 = vmul.f32 1.442695, %v937_v56 }
 0x411   : > { %1513 = vpow2.f32 %v1004_v55  ;;  %v1061_v41 = vadd.f32 %v2172_v60, %v2168_v58  ;;  %v2176_v37 = vpop.eup %1509 }
 0x412   : > { %1515 = vpow2.f32 %v1006_v57  ;;  %v2180_v63 = vpop.eup %1511 }
 0x413   : > { %1053 = vadd.xlane.f32.xlu1 %v1052_v59  ;;  %1062 = vadd.xlane.f32.xlu2 %v1061_v41  ;;  %1517 = vpow2.f32 %v984_v40  ;;  %v1046_v12 = vadd.f32 %v2180_v63, %v2176_v37 }
 0x414   : > { %v907_v29 = vpop.xlane.xlu1 %906  ;;  %1519 = vpow2.f32 %v986_v42  ;;  %v895_v8 = vpop.xlane.xlu2 %894 }
 0x415   : > { %v942_v30 = vsub.f32 %v2120_v34, %v907_v29  ;;  %v943_v62 = vsub.f32 %v2122_v35, %v907_v29  ;;  %v939_v34 = vsub.f32 %v2112_v2, %v901_v3  ;;  %v935_v51 = vsub.f32 %v2104_v28, %v895_v8 }
 0x417   : > { %v996_v7 = vmul.f32 1.442695, %v942_v30  ;;  %v998_v9 = vmul.f32 1.442695, %v943_v62  ;;  %v2182_v10 = vpop.eup %1513  ;;  %v990_v38 = vmul.f32 1.442695, %v939_v34 }
 0x418   : > { %v2187_v13 = vpop.eup %1515  ;;  %v982_v57 = vmul.f32 1.442695, %v935_v51 }
 0x419   : > { %1521 = vpow2.f32 %v996_v7  ;;  %v1055_v35 = vadd.f32 %v2187_v13, %v2182_v10  ;;  %v2192_v39 = vpop.eup %1517 }
 0x41a   : > { %1523 = vpow2.f32 %v998_v9  ;;  %v2199_v2 = vpop.eup %1519  ;;  %v1372_v9 = vld [vmem:[%s2394_s5 + $0x8] sm:$0xff] }
 0x41b   : > { %1047 = vadd.xlane.f32.xlu1 %v1046_v12  ;;  %1056 = vadd.xlane.f32.xlu2 %v1055_v35  ;;  %1525 = vpow2.f32 %v988_v48 }
 0x41c   : > { %v892_v15 = vpop.xlane.xlu1 %891  ;;  %1527 = vpow2.f32 %v990_v38  ;;  %v889_v31 = vpop.xlane.xlu2 %888  ;;  %1342 = vmatmul.msk.bf16.gmra.mxu0 %vm358_vm0, %v1372_v9  ;;  %1344 = vmatmul.msk.bf16.gmra.mxu1 %vm358_vm0, %v1372_v9  ;;  %v1130_v9 = vld [vmem:[%s2395_s6 + $0x10] sm:$0xff] }
 0x41d   : > { %v932_v14 = vsub.f32 %v2098_v25, %v892_v15  ;;  %v933_v49 = vsub.f32 %v2100_v26, %v892_v15  ;;  %v934_v25 = vsub.f32 %v2102_v27, %v895_v8  ;;  %v1040_v26 = vadd.f32 %v2199_v2, %v2192_v39 }
 0x41e   : > { %v930_v29 = vsub.f32 %v2094_v23, %v889_v31  ;;  %v931_v62 = vsub.f32 %v2096_v24, %v889_v31 }
 0x41f   : > { %v976_v44 = vmul.f32 1.442695, %v932_v14  ;;  %v978_v50 = vmul.f32 1.442695, %v933_v49  ;;  %v2203_v46 = vpop.eup %1521  ;;  %v980_v55 = vmul.f32 1.442695, %v934_v25 }
 0x420   : > { %v2208_v47 = vpop.eup %1523  ;;  %v972_v8 = vmul.f32 1.442695, %v930_v29  ;;  %v974_v24 = vmul.f32 1.442695, %v931_v62 }
 0x421   : > { %1529 = vpow2.f32 %v976_v44  ;;  %v1049_v53 = vadd.f32 %v2208_v47, %v2203_v46  ;;  %v2215_v59 = vpop.eup %1525 }
 0x422   : > { %1531 = vpow2.f32 %v978_v50  ;;  %v2217_v41 = vpop.eup %1527 }
 0x423   : > { %1041 = vadd.xlane.f32.xlu1 %v1040_v26  ;;  %1050 = vadd.xlane.f32.xlu2 %v1049_v53  ;;  %1533 = vpow2.f32 %v980_v55 }
 0x424   : > { %v886_v33 = vpop.xlane.xlu1 %885  ;;  %1535 = vpow2.f32 %v982_v57  ;;  %v883_v3 = vpop.xlane.xlu2 %882 }
 0x425   : > { %v928_v27 = vsub.f32 %v2090_v6, %v886_v33  ;;  %v929_v56 = vsub.f32 %v2092_v22, %v886_v33  ;;  %v1043_v22 = vadd.f32 %v2217_v41, %v2215_v59  ;;  %v926_v34 = vsub.f32 %v2086_v0, %v883_v3 }
 0x427   : > { %v968_v40 = vmul.f32 1.442695, %v928_v27  ;;  %v970_v28 = vmul.f32 1.442695, %v929_v56  ;;  %v2219_v42 = vpop.eup %1529 }
 0x428   : > { %v2222_v30 = vpop.eup %1531 }
 0x429   : > { %1537 = vpow2.f32 %v968_v40  ;;  %v1034_v6 = vadd.f32 %v2222_v30, %v2219_v42  ;;  %v2234_v12 = vpop.eup %1533 }
 0x42a   : > { %1539 = vpow2.f32 %v970_v28  ;;  %v2239_v15 = vpop.eup %1535 }
 0x42b   : > { %1035 = vadd.xlane.f32.xlu1 %v1034_v6  ;;  %1044 = vadd.xlane.f32.xlu2 %v1043_v22  ;;  %1541 = vpow2.f32 %v972_v8  ;;  %v1037_v36 = vadd.f32 %v2239_v15, %v2234_v12  ;;  %v1128_v8 = vld [vmem:[%s2395_s6] sm:$0xff] }
 0x42c   : > { %v880_v7 = vpop.xlane.xlu1 %879  ;;  %1543 = vpow2.f32 %v974_v24  ;;  %v877_v25 = vpop.xlane.xlu2 %876  ;;  %v1131_v24 = vld [vmem:[%s2395_s6 + $0x18] sm:$0xff] }
 0x42d   : > { %v924_v23 = vsub.f32 %v2082_v20, %v880_v7  ;;  %v925_v11 = vsub.f32 %v2084_v5, %v880_v7  ;;  %v927_v20 = vsub.f32 %v2088_v1, %v883_v3  ;;  %v964_v5 = vmul.f32 1.442695, %v926_v34 }
 0x42e   : > { %v922_v55 = vsub.f32 %v2078_v18, %v877_v25 }
 0x42f   : > { %v960_v35 = vmul.f32 1.442695, %v924_v23  ;;  %v962_v48 = vmul.f32 1.442695, %v925_v11  ;;  %v2242_v14 = vpop.eup %1537  ;;  %v966_v38 = vmul.f32 1.442695, %v927_v20 }
 0x430   : > { %v2244_v49 = vpop.eup %1539  ;;  %v956_v40 = vmul.f32 1.442695, %v922_v55  ;;  %v1129_v23 = vld [vmem:[%s2395_s6 + $0x8] sm:$0xff] }
 0x431   : > { %1545 = vpow2.f32 %v960_v35  ;;  %v1028_v0 = vadd.f32 %v2244_v49, %v2242_v14  ;;  %v2252_v26 = vpop.eup %1541 }
 0x432   : > { %1547 = vpow2.f32 %v962_v48  ;;  %v2254_v53 = vpop.eup %1543 }
 0x433   : > { %1029 = vadd.xlane.f32.xlu1 %v1028_v0  ;;  %1038 = vadd.xlane.f32.xlu2 %v1037_v36  ;;  %1549 = vpow2.f32 %v964_v5  ;;  %v1031_v56 = vadd.f32 %v2254_v53, %v2252_v26 }
 0x434   : > { %v874_v44 = vpop.xlane.xlu1 %873  ;;  %1551 = vpow2.f32 %v966_v38 }
 0x435   : > { %v920_v1 = vsub.f32 %v2074_v16, %v874_v44  ;;  %v921_v50 = vsub.f32 %v2076_v17, %v874_v44  ;;  %v923_v16 = vsub.f32 %v2080_v19, %v877_v25 }
 0x437   : > { %v952_v51 = vmul.f32 1.442695, %v920_v1  ;;  %v954_v31 = vmul.f32 1.442695, %v921_v50  ;;  %v2256_v33 = vpop.eup %1545  ;;  %v958_v18 = vmul.f32 1.442695, %v923_v16 }
 0x438   : > { %v2259_v27 = vpop.eup %1547 }
 0x439   : > { %1553 = vpow2.f32 %v952_v51  ;;  %v1022_v17 = vadd.f32 %v2259_v27, %v2256_v33  ;;  %v2266_v57 = vpop.eup %1549 }
 0x43a   : > { %1555 = vpow2.f32 %v954_v31  ;;  %v2268_v28 = vpop.eup %1551 }
 0x43b   : > { %1023 = vadd.xlane.f32.xlu1 %v1022_v17  ;;  %1032 = vadd.xlane.f32.xlu2 %v1031_v56  ;;  %1557 = vpow2.f32 %v956_v40  ;;  %v1025_v6 = vadd.f32 %v2268_v28, %v2266_v57 }
 0x43c   : > { %1559 = vpow2.f32 %v958_v18 }
 0x43f   : > { %v2270_v29 = vpop.eup %1553 }
 0x440   : > { %v2272_v62 = vpop.eup %1555 }
 0x441   : > { %v1016_v19 = vadd.f32 %v2272_v62, %v2270_v29  ;;  %v2278_v22 = vpop.eup %1557 }
 0x442   : > { %v2280_v3 = vpop.eup %1559 }
 0x443   : > { %1017 = vadd.xlane.f32.xlu1 %v1016_v19  ;;  %1026 = vadd.xlane.f32.xlu2 %v1025_v6  ;;  %v1019_v7 = vadd.f32 %v2280_v3, %v2278_v22 }
 0x44b   : > { %1020 = vadd.xlane.f32.xlu2 %v1019_v7 }
 0x45c   : > { %1134 = vperm.xlu1 %1488, %v1128_v8  }
 0x463   : > { %1139 = vperm.xlu2 %1486, %v1129_v23  }
 0x464   : > { %1144 = vperm.xlu1 %1488, %v1130_v9  }
 0x46b   : > { %1149 = vperm.xlu2 %1486, %v1131_v24  }
 0x47e   : > { %v1060_v11 = vpop.xlane.xlu1 %1059 }
 0x47f   : > { %1561 = vrcp.f32 %v1060_v11 }
 0x485   : > { %v1562_v20 = vpop.eup %1561 }
 0x486   : > { %v1054_v34 = vpop.xlane.xlu1 %1053  ;;  %v1063_v35 = vpop.xlane.xlu2 %1062  ;;  %v1108_v0 = vmul.f32 %v1562_v20, %v2152_v45  ;;  %v1109_v36 = vmul.f32 %v1562_v20, %v2155_v43 }
 0x487   : > { %1563 = vrcp.f32 %v1063_v35 }
 0x488   : > { %1565 = vrcp.f32 %v1054_v34 }
 0x48d   : > { %v1564_v5 = vpop.eup %1563 }
 0x48e   : > { %v1048_v48 = vpop.xlane.xlu1 %1047  ;;  %v1110_v38 = vmul.f32 %v1564_v5, %v2168_v58  ;;  %v1111_v44 = vmul.f32 %v1564_v5, %v2172_v60  ;;  %v1057_v1 = vpop.xlane.xlu2 %1056 }
 0x48f   : > { %1567 = vrcp.f32 %v1057_v1  ;;  %v1566_v51 = vpop.eup %1565 }
 0x490   : > { %v1126_v50 = vpack.c.bf16 %v1110_v38, %v1108_v0  ;;  %v1127_v25 = vpack.c.bf16 %v1111_v44, %v1109_v36  ;;  %1569 = vrcp.f32 %v1048_v48  ;;  %v1104_v17 = vmul.f32 %v1566_v51, %v2160_v52 }
 0x491   : > { %v1105_v43 = vmul.f32 %v1566_v51, %v2164_v54 }
 0x492   : > { %1152 = vmatpush.bf16.xpose.msrb.mxu0 %v1126_v50  ;;  %1171 = vmatpush.bf16.xpose.msrb.mxu1 %v1127_v25 }
 0x495   : > { %v1568_v55 = vpop.eup %1567 }
 0x496   : > { %v1042_v31 = vpop.xlane.xlu1 %1041  ;;  %v1051_v16 = vpop.xlane.xlu2 %1050  ;;  %v1106_v45 = vmul.f32 %v1568_v55, %v2182_v10  ;;  %v1107_v58 = vmul.f32 %v1568_v55, %v2187_v13 }
 0x497   : > { %1571 = vrcp.f32 %v1051_v16  ;;  %v1570_v40 = vpop.eup %1569 }
 0x498   : > { %v1124_v60 = vpack.c.bf16 %v1106_v45, %v1104_v17  ;;  %v1125_v56 = vpack.c.bf16 %v1107_v58, %v1105_v43  ;;  %v1100_v19 = vmul.f32 %v1570_v40, %v2176_v37  ;;  %1573 = vrcp.f32 %v1042_v31  ;;  %v660_v43 = vpop.f32.mrf.mxu0 }
 0x499   : > { %v1101_v10 = vmul.f32 %v1570_v40, %v2180_v63 }
 0x49a   : > { %1153 = vmatpush.bf16.xpose.msrb.mxu0 %v1124_v60  ;;  %1172 = vmatpush.bf16.xpose.msrb.mxu1 %v1125_v56 }
 0x49d   : > { %v1572_v18 = vpop.eup %1571 }
 0x49e   : > { %v1036_v6 = vpop.xlane.xlu1 %1035  ;;  %v1045_v7 = vpop.xlane.xlu2 %1044  ;;  %v1102_v52 = vmul.f32 %v1572_v18, %v2203_v46  ;;  %v1103_v54 = vmul.f32 %v1572_v18, %v2208_v47 }
 0x49f   : > { %1575 = vrcp.f32 %v1045_v7  ;;  %v1574_v23 = vpop.eup %1573 }
 0x4a0   : > { %v1122_v13 = vpack.c.bf16 %v1102_v52, %v1100_v19  ;;  %v1123_v8 = vpack.c.bf16 %v1103_v54, %v1101_v10  ;;  %1577 = vrcp.f32 %v1036_v6  ;;  %v1096_v37 = vmul.f32 %v1574_v23, %v2192_v39  ;;  %v662_v52 = vpop.f32.mrf.mxu0 }
 0x4a1   : > { %v1097_v46 = vmul.f32 %v1574_v23, %v2199_v2 }
 0x4a2   : > { %1154 = vmatpush.bf16.xpose.msrb.mxu0 %v1122_v13  ;;  %1173 = vmatpush.bf16.xpose.msrb.mxu1 %v1123_v8 }
 0x4a5   : > { %v1576_v9 = vpop.eup %1575 }
 0x4a6   : > { %v1030_v24 = vpop.xlane.xlu1 %1029  ;;  %v1039_v11 = vpop.xlane.xlu2 %1038  ;;  %v1098_v34 = vmul.f32 %v1576_v9, %v2215_v59  ;;  %v1099_v63 = vmul.f32 %v1576_v9, %v2217_v41 }
 0x4a7   : > { %1579 = vrcp.f32 %v1039_v11  ;;  %v1578_v20 = vpop.eup %1577 }
 0x4a8   : > { %v1120_v47 = vpack.c.bf16 %v1098_v34, %v1096_v37  ;;  %v1121_v35 = vpack.c.bf16 %v1099_v63, %v1097_v46  ;;  %1581 = vrcp.f32 %v1030_v24  ;;  %v1092_v0 = vmul.f32 %v1578_v20, %v2219_v42  ;;  %v665_v54 = vpop.f32.mrf.mxu0 }
 0x4a9   : > { %v1093_v39 = vmul.f32 %v1578_v20, %v2222_v30 }
 0x4aa   : > { %1155 = vmatpush.bf16.xpose.msrb.mxu0 %v1120_v47  ;;  %1174 = vmatpush.bf16.xpose.msrb.mxu1 %v1121_v35 }
 0x4ad   : > { %v1580_v48 = vpop.eup %1579 }
 0x4ae   : > { %v1033_v5 = vpop.xlane.xlu2 %1032  ;;  %v1094_v36 = vmul.f32 %v1580_v48, %v2234_v12  ;;  %v1095_v59 = vmul.f32 %v1580_v48, %v2239_v15  ;;  %v1024_v2 = vpop.xlane.xlu1 %1023 }
 0x4af   : > { %1583 = vrcp.f32 %v1033_v5  ;;  %v1582_v44 = vpop.eup %1581 }
 0x4b0   : > { %v1118_v41 = vpack.c.bf16 %v1094_v36, %v1092_v0  ;;  %v1119_v38 = vpack.c.bf16 %v1095_v59, %v1093_v39  ;;  %1585 = vrcp.f32 %v1024_v2  ;;  %v1088_v25 = vmul.f32 %v1582_v44, %v2242_v14  ;;  %v679_v14 = vpop.f32.mrf.mxu1  ;;  %v667_v13 = vpop.f32.mrf.mxu0 }
 0x4b1   : > { %v1089_v12 = vmul.f32 %v1582_v44, %v2244_v49  ;;  %v691_v8 = vpack.c.bf16 %v667_v13, %v665_v54 }
 0x4b2   : > { %1156 = vmatpush.bf16.xpose.msrb.mxu0 %v1118_v41  ;;  %1175 = vmatpush.bf16.xpose.msrb.mxu1 %v1119_v38 }
 0x4b5   : > { %v1584_v1 = vpop.eup %1583 }
 0x4b6   : > { %v1027_v50 = vpop.xlane.xlu2 %1026  ;;  %v1090_v42 = vmul.f32 %v1584_v1, %v2252_v26  ;;  %v1091_v30 = vmul.f32 %v1584_v1, %v2254_v53  ;;  %v1018_v31 = vpop.xlane.xlu1 %1017 }
 0x4b7   : > { %1587 = vrcp.f32 %v1027_v50  ;;  %v1586_v55 = vpop.eup %1585 }
 0x4b8   : > { %v1116_v15 = vpack.c.bf16 %v1090_v42, %v1088_v25  ;;  %v1117_v51 = vpack.c.bf16 %v1091_v30, %v1089_v12  ;;  %1589 = vrcp.f32 %v1018_v31  ;;  %v1084_v45 = vmul.f32 %v1586_v55, %v2256_v33 }
 0x4b9   : > { %v1085_v49 = vmul.f32 %v1586_v55, %v2259_v27  ;;  %v681_v27 = vpop.f32.mrf.mxu1 }
 0x4ba   : > { %1157 = vmatpush.bf16.xpose.msrb.mxu0 %v1116_v15  ;;  %1176 = vmatpush.bf16.xpose.msrb.mxu1 %v1117_v51  ;;  %v690_v10 = vpack.c.bf16 %v681_v27, %v679_v14 }
 0x4bd   : > { %v1588_v16 = vpop.eup %1587 }
 0x4be   : > { %v1021_v17 = vpop.xlane.xlu2 %1020  ;;  %v1086_v26 = vmul.f32 %v1588_v16, %v2266_v57  ;;  %v1087_v53 = vmul.f32 %v1588_v16, %v2268_v28  ;;  %v1590_v56 = vpop.eup %1589  ;;  %v689_v28 = vpack.c.bf16 %v662_v52, %v660_v43 }
 0x4bf   : > { %1591 = vrcp.f32 %v1021_v17  ;;  %v1080_v18 = vmul.f32 %v1590_v56, %v2270_v29  ;;  %v1081_v33 = vmul.f32 %v1590_v56, %v2272_v62 }
 0x4c0   : > { %v1114_v58 = vpack.c.bf16 %v1086_v26, %v1084_v45  ;;  %v1115_v60 = vpack.c.bf16 %v1087_v53, %v1085_v49 }
 0x4c1   : > { %v684_v29 = vpop.f32.mrf.mxu1 }
 0x4c2   : > { %1158 = vmatpush.bf16.xpose.msrb.mxu0 %v1114_v58  ;;  %1177 = vmatpush.bf16.xpose.msrb.mxu1 %v1115_v60 }
 0x4c5   : > { %v1592_v40 = vpop.eup %1591 }
 0x4c6   : > { %v1082_v19 = vmul.f32 %v1592_v40, %v2278_v22  ;;  %v1083_v6 = vmul.f32 %v1592_v40, %v2280_v3  ;;  %v1140_v34 = vpop.permute.xlu2 %1139 }
 0x4c8   : > { %v1112_v7 = vpack.c.bf16 %v1082_v19, %v1080_v18  ;;  %v1113_v57 = vpack.c.bf16 %v1083_v6, %v1081_v33 }
 0x4c9   : > { %v686_v22 = vpop.f32.mrf.mxu1 }
 0x4ca   : > { %1159 = vmatpush.bf16.xpose.msrb.mxu0 %v1112_v7  ;;  %1178 = vmatpush.bf16.xpose.msrb.mxu1 %v1113_v57  ;;  %v692_v62 = vpack.c.bf16 %v686_v22, %v684_v29 }
 0x4ce   : > { %v1135_v3 = vpop.permute.xlu1 %1134  ;;  %v1150_v59 = vpop.permute.xlu2 %1149 }
 0x4d1   : > { %1160 = vmatmul.bf16.vlgmr.msrb.gmra.mxu0 %v689_v28  ;;  %1179 = vmatmul.bf16.vlgmr.msrb.gmra.mxu1 %v690_v10 }
 0x4d6   : > { %v1145_v48 = vpop.permute.xlu1 %1144 }
 0x4e1   : > { %1165 = vmatmul.bf16.gmra.mxu0 %v691_v8  ;;  %1184 = vmatmul.bf16.gmra.mxu1 %v692_v62 }
 0x54e   : > { %v1161_v23 = vpop.f32.mrf.mxu0  ;;  %v1180_v9 = vpop.f32.mrf.mxu1 }
 0x54f   : > { %v1162_v24 = vadd.f32 %v1161_v23, %v1135_v3 }
 0x551   : > { %v1181_v11 = vadd.f32 %v1180_v9, %v1162_v24 }
 0x553   : > { %v1190_v37 = vadd.f32 %v1181_v11, %v2025_v61 }
 0x555   : > { %1194 = vst [vmem:[%s312_s14] sm:$0xff] %v1190_v37 }
 0x556   : > { %v1163_v46 = vpop.f32.mrf.mxu0  ;;  %v1182_v63 = vpop.f32.mrf.mxu1 }
 0x557   : > { %v1164_v47 = vadd.f32 %v1163_v46, %v1140_v34 }
 0x559   : > { %v1183_v35 = vadd.f32 %v1182_v63, %v1164_v47 }
 0x55b   : > { %v1191_v20 = vadd.f32 %v1183_v35, %v2033_v21 }
 0x55d   : > { %1195 = vst [vmem:[%s312_s14 + $0x8] sm:$0xff] %v1191_v20 }
 0x55e   : > { %v1166_v5 = vpop.f32.mrf.mxu0  ;;  %v1185_v0 = vpop.f32.mrf.mxu1 }
 0x55f   : > { %v1167_v36 = vadd.f32 %v1166_v5, %v1145_v48 }
 0x561   : > { %v1186_v39 = vadd.f32 %v1185_v0, %v1167_v36 }
 0x563   : > { %v1192_v61 = vadd.f32 %v1186_v39, %v2047_v4 }
 0x565   : > { %1196 = vst [vmem:[%s312_s14 + $0x10] sm:$0xff] %v1192_v61 }
 0x566   : > { %v1168_v21 = vpop.f32.mrf.mxu0  ;;  %v1187_v41 = vpop.f32.mrf.mxu1 }
 0x567   : > { %v1169_v2 = vadd.f32 %v1168_v21, %v1150_v59 }
 0x569   : > { %v1188_v38 = vadd.f32 %v1187_v41, %v1169_v2 }
 0x56b   : > { %v1193_v44 = vadd.f32 %v1188_v38, %v2055_v32 }
 0x56d   : > { %1197 = vst [vmem:[%s312_s14 + $0x18] sm:$0xff] %v1193_v44 }
 0x56e   : > { %1650 = shalt.err (!%p1647_p0)
}
 0x56f   : > { %s1750_s7 = smov 128   ;;  %s1751_s14 = smov 256  }
 0x570   : > { %s1752_s27 = smov 8  }
 0x571   : > { %1379 = dma.vmem_to_hbm [thread:$0]  (%p1875_p12), %s1213_s19, 512, %s1215_s8, %s1199_s30, %s1750_s7, %s1751_s14, %s1752_s27  }
 0x572 PF: > { %p1390_p1 = scmp.ge.s32.totalorder %s1745_s11, 2  ;;  %s1229_s12 = sand.u32 1, %s1705_s24  }
 0x573   : > { %s1230_s16 = scalar_lea.sflag [#allocation4], %s1229_s12 }
 0x574   : > { %p1386_p4 = pnand %p1390_p1, %p1888_p2 }
 0x576   : > { %p1387_p5 = pneg %p1386_p4 }
 0x578   : > { %1700 = dma.done.wait (%p1387_p5), %s1230_s16, 512  }
 0x579   : > { %1702 = vsyncadd (%p1387_p5), %s1230_s16, 4294966784  ;;  %s23_s11 = sadd.s32 1, %s1745_s11   ;;  %s2418_s15 = sld [smem:[#allocation14_spill]] }
 0x57a   : > { %p20_p6 = scmp.ge.s32.totalorder %s23_s11, 6   ;;  %s2419_s13 = sld [smem:[#allocation13_spill]] }
 0x57b   : > { %s2420_s30 = sld [smem:[#allocation8_spill]]  ;;  %s2424_s24 = smov %s1709_s25 }
 0x57c   : > { %s2421_s8 = sld [smem:[#allocation9_spill]]  ;;  %s2425_s25 = smov %s1713_s26 }
 0x57d   : > { %s2422_s9 = sld [smem:[#allocation10_spill]]  ;;  %s2427_s27 = smov %s1721_s28 }
 0x57e   : > { %s2423_s10 = sld [smem:[#allocation11_spill]]  ;;  %s2428_s28 = smov %s1725_s29 }
 0x57f   : > { %s2426_s26 = smov %s2418_s15  ;;  %22 = sbr.rel (!%p20_p6) target bundleno = 11 (0xb), region = 94 }
 0x580   : > { %s2429_s29 = smov %s2419_s13 }
 0x584   :  { %1236 = vsyncpa [#allocation3], 1 }
 0x585   :  { %1238 = vsyncpa [#allocation3 + $0x1], 1 }
 0x586   :  { %1239 = vsyncpa [#allocation4], 1 }
 0x587   :  { %1241 = vsyncpa [#allocation4 + $0x1], 1 }

</bundles_post_ra>
